<compile_context>
chip_gen: v5e
topology: v5e:2x2
jax: 0.10.0
libtpu: 0.0.40
codegen_flags: <defaults>
</compile_context>

<pallas_src>
import functools

import numpy as np
import jax
import jax.numpy as jnp
from jax.experimental import pallas as pl
from jax.experimental.pallas import tpu as pltpu

NEG_SLOPE = 0.01      # torch.nn.LeakyReLU default
LANE = 128            # fast (lane) axis alignment
SUBLANE_BF16 = 16     # bf16 packs 16 rows / vreg
TILE_B_MAX = 256      # rows per batch tile (sweep 512-1024 on v6e for big batches)
VMEM_LIMIT = 48 * 1024 * 1024   # fits v7x 64 MiB; raises v5e/v6e scoped default


def _round_up(n, m):
    return ((n + m - 1) // m) * m


def _fused_mlp_kernel(*refs):
    """refs = (x_ref, w0, b0, w1, b1, ..., o_ref); all padded, VMEM-resident.

    x/o blocks are (TILE_B, D*) f32; weights are bf16, biases f32.
    """
    x_ref, o_ref = refs[0], refs[-1]
    n_layers = (len(refs) - 2) // 2
    x = x_ref[...]                                   # f32 activation tile
    for l in range(n_layers):
        w = refs[1 + 2 * l][...]                     # bf16 weight (resident)
        b = refs[2 + 2 * l][...]                     # f32 bias
        y = jnp.dot(x.astype(jnp.bfloat16), w,       # MXU bf16 path, f32 acc
                    preferred_element_type=jnp.float32) + b
        x = jnp.maximum(y, NEG_SLOPE * y)            # LeakyReLU, f32 epilogue
    o_ref[...] = x


def prepare_params(params, feat_range=None):
    """One-time prep: fold 1/feat_range into W0, cast weights to bf16, zero-pad
    every weight/bias to lane-aligned shapes.  Returns (flat_params, out_dim)."""
    flat = []
    for li, (w, b) in enumerate(params):
        w = jnp.asarray(w, jnp.float32)
        b = jnp.asarray(b, jnp.float32)
        if li == 0 and feat_range is not None:
            fr = jnp.asarray(feat_range, jnp.float32)
            fr = jnp.where(fr == 0, 1.0, fr)          # guard unsanitized zeros
            w = w * (1.0 / fr)[:, None]               # (x/fr)@W == x@(diag(1/fr)W)
        din, dout = w.shape
        dinp, doutp = _round_up(din, LANE), _round_up(dout, LANE)
        wp = jnp.pad(w, ((0, dinp - din), (0, doutp - dout))).astype(jnp.bfloat16)
        bp = jnp.pad(b[None, :], ((0, 0), (0, doutp - dout)))        # f32 bias
        flat += [wp, bp]
    return tuple(flat), params[-1][0].shape[1]


@functools.partial(jax.jit, static_argnames=("out_dim",))
def mlp_base_forward(x, flat_params, out_dim):
    """Fused MLPBase.forward on prepped parameters (single batch-tiled pallas_call)."""
    B, Din = x.shape
    Dinp = flat_params[0].shape[0]
    Doutp = flat_params[-1].shape[1]

    tile_b = min(TILE_B_MAX, _round_up(B, SUBLANE_BF16))
    Bp = _round_up(B, tile_b)

    xp = jnp.pad(x.astype(jnp.float32), ((0, Bp - B), (0, Dinp - Din)))

    in_specs = [pl.BlockSpec((tile_b, Dinp), lambda i: (i, 0))]
    for w, b in zip(flat_params[0::2], flat_params[1::2]):
        # Constant index maps: each weight/bias is fetched once and kept
        # resident across all batch tiles.
        in_specs.append(pl.BlockSpec(w.shape, lambda i: (0, 0)))
        in_specs.append(pl.BlockSpec(b.shape, lambda i: (0, 0)))

    out_p = pl.pallas_call(
        _fused_mlp_kernel,
        out_shape=jax.ShapeDtypeStruct((Bp, Doutp), jnp.float32),
        grid=(Bp // tile_b,),
        in_specs=in_specs,
        out_specs=pl.BlockSpec((tile_b, Doutp), lambda i: (i, 0)),
        compiler_params=pltpu.CompilerParams(
            dimension_semantics=("parallel",),        # megacore on v7x
            vmem_limit_bytes=VMEM_LIMIT,
        ),
    )(xp, *flat_params)

    return out_p[:B, :out_dim]


def init_params(key, in_dim, dims):
    """Deterministic synthetic init, matching nn.Linear shapes (stored transposed)."""
    params = []
    in_dims = [in_dim] + list(dims[:-1])
    for idim, odim in zip(in_dims, dims):
        key, kw, kb = jax.random.split(key, 3)
        bound = 1.0 / np.sqrt(idim)             # PyTorch nn.Linear default bound
        w = jax.random.uniform(kw, (idim, odim), jnp.float32, -bound, bound)
        b = jax.random.uniform(kb, (odim,), jnp.float32, -bound, bound)
        params.append((w, b))
    return params


def reference_forward(x, params, feat_range=None):
    """Pure-f32 reference matching the PyTorch module semantics."""
    if feat_range is not None:
        x = x / feat_range
    for w, b in params:
        y = x @ w + b
        x = jnp.where(y >= 0, y, NEG_SLOPE * y)
    return x


if __name__ == "__main__":
    key = jax.random.PRNGKey(0)

    batch = 4
    in_dim = 16                       # obs_space.low.shape[0]
    dims = [32, 32, 8]                # MLPBase(dims=...)

    # ranges: (in_dim, 2) low/high per feature; feat_range = |ranges|.max(axis=1), zeros -> 1
    k_r, k_x, k_p = jax.random.split(key, 3)
    ranges_np = np.array(jax.random.uniform(k_r, (in_dim, 2), jnp.float32, -5.0, 5.0))
    ranges_np[0, :] = 0.0             # exercise the zero -> 1 branch
    feat_range_np = np.abs(ranges_np).max(axis=1)
    feat_range_np[feat_range_np == 0] = 1.0
    feat_range = jnp.asarray(feat_range_np, jnp.float32)

    x = jax.random.normal(k_x, (batch, in_dim), jnp.float32)
    params = init_params(k_p, in_dim, dims)

    # One-time parameter prep (scale folding + bf16 cast + padding), out of the hot path.
    flat_params, out_dim = prepare_params(params, feat_range)

    out = mlp_base_forward(x, flat_params, out_dim)
    out = jax.block_until_ready(out)

    ref = reference_forward(x, params, feat_range)
    assert out.shape == (batch, dims[-1])
    # bf16 matmul inputs (f32 accumulation) -> loosened tolerance vs pure-f32 reference.
    np.testing.assert_allclose(np.asarray(out), np.asarray(ref), rtol=2e-2, atol=2e-2)

    print("KERNEL_OK")
</pallas_src>

<mosaic_0001>
module attributes {stable_mosaic.version = 11 : i64} {
  func.func @_fused_mlp_kernel(%arg0: i32, %arg1: memref<16x128xf32, #tpu.memory_space<vmem>>, %arg2: memref<128x128xbf16, #tpu.memory_space<vmem>>, %arg3: memref<1x128xf32, #tpu.memory_space<vmem>>, %arg4: memref<128x128xbf16, #tpu.memory_space<vmem>>, %arg5: memref<1x128xf32, #tpu.memory_space<vmem>>, %arg6: memref<128x128xbf16, #tpu.memory_space<vmem>>, %arg7: memref<1x128xf32, #tpu.memory_space<vmem>>, %arg8: memref<16x128xf32, #tpu.memory_space<vmem>>) attributes {dimension_semantics = [#tpu.dimension_semantics<parallel>], iteration_bounds = array<i64: 1>, scalar_prefetch = 0 : i64, scratch_operands = 0 : i64, tpu.core_type = #tpu.core_type<tc>, window_params = [{transform_indices = @transform_0, window_bounds = array<i64: 16, 128>}, {pipeline_mode = #tpu.pipeline_mode<synchronous>, transform_indices = @transform_1, window_bounds = array<i64: 128, 128>}, {pipeline_mode = #tpu.pipeline_mode<synchronous>, transform_indices = @transform_2, window_bounds = array<i64: 1, 128>}, {pipeline_mode = #tpu.pipeline_mode<synchronous>, transform_indices = @transform_3, window_bounds = array<i64: 128, 128>}, {pipeline_mode = #tpu.pipeline_mode<synchronous>, transform_indices = @transform_4, window_bounds = array<i64: 1, 128>}, {pipeline_mode = #tpu.pipeline_mode<synchronous>, transform_indices = @transform_5, window_bounds = array<i64: 128, 128>}, {pipeline_mode = #tpu.pipeline_mode<synchronous>, transform_indices = @transform_6, window_bounds = array<i64: 1, 128>}, {transform_indices = @transform_7, window_bounds = array<i64: 16, 128>}]} {
    %c0 = arith.constant 0 : index
    %c0_0 = arith.constant 0 : index
    %0 = vector.load %arg1[%c0, %c0_0] : memref<16x128xf32, #tpu.memory_space<vmem>>, vector<16x128xf32>
    %c0_1 = arith.constant 0 : index
    %c0_2 = arith.constant 0 : index
    %1 = vector.load %arg2[%c0_1, %c0_2] : memref<128x128xbf16, #tpu.memory_space<vmem>>, vector<128x128xbf16>
    %c0_3 = arith.constant 0 : index
    %c0_4 = arith.constant 0 : index
    %2 = vector.load %arg3[%c0_3, %c0_4] : memref<1x128xf32, #tpu.memory_space<vmem>>, vector<1x128xf32>
    %3 = arith.truncf %0 : vector<16x128xf32> to vector<16x128xbf16>
    %cst = arith.constant dense<0.000000e+00> : vector<16x128xf32>
    %4 = tpu.matmul %3, %1, %cst {dimension_numbers = #tpu.dot_dimension_numbers<[1], [0], [0], [1], [0, 0, 1, 1], [], []>} : vector<16x128xbf16>, vector<128x128xbf16>, vector<16x128xf32> -> vector<16x128xf32>
    %5 = vector.broadcast %2 : vector<1x128xf32> to vector<16x128xf32>
    %6 = arith.addf %4, %5 : vector<16x128xf32>
    %cst_5 = arith.constant 0.00999999977 : f32
    %7 = vector.broadcast %cst_5 : f32 to vector<16x128xf32>
    %8 = arith.mulf %7, %6 : vector<16x128xf32>
    %9 = arith.maximumf %6, %8 : vector<16x128xf32>
    %c0_6 = arith.constant 0 : index
    %c0_7 = arith.constant 0 : index
    %10 = vector.load %arg4[%c0_6, %c0_7] : memref<128x128xbf16, #tpu.memory_space<vmem>>, vector<128x128xbf16>
    %c0_8 = arith.constant 0 : index
    %c0_9 = arith.constant 0 : index
    %11 = vector.load %arg5[%c0_8, %c0_9] : memref<1x128xf32, #tpu.memory_space<vmem>>, vector<1x128xf32>
    %12 = arith.truncf %9 : vector<16x128xf32> to vector<16x128xbf16>
    %cst_10 = arith.constant dense<0.000000e+00> : vector<16x128xf32>
    %13 = tpu.matmul %12, %10, %cst_10 {dimension_numbers = #tpu.dot_dimension_numbers<[1], [0], [0], [1], [0, 0, 1, 1], [], []>} : vector<16x128xbf16>, vector<128x128xbf16>, vector<16x128xf32> -> vector<16x128xf32>
    %14 = vector.broadcast %11 : vector<1x128xf32> to vector<16x128xf32>
    %15 = arith.addf %13, %14 : vector<16x128xf32>
    %cst_11 = arith.constant 0.00999999977 : f32
    %16 = vector.broadcast %cst_11 : f32 to vector<16x128xf32>
    %17 = arith.mulf %16, %15 : vector<16x128xf32>
    %18 = arith.maximumf %15, %17 : vector<16x128xf32>
    %c0_12 = arith.constant 0 : index
    %c0_13 = arith.constant 0 : index
    %19 = vector.load %arg6[%c0_12, %c0_13] : memref<128x128xbf16, #tpu.memory_space<vmem>>, vector<128x128xbf16>
    %c0_14 = arith.constant 0 : index
    %c0_15 = arith.constant 0 : index
    %20 = vector.load %arg7[%c0_14, %c0_15] : memref<1x128xf32, #tpu.memory_space<vmem>>, vector<1x128xf32>
    %21 = arith.truncf %18 : vector<16x128xf32> to vector<16x128xbf16>
    %cst_16 = arith.constant dense<0.000000e+00> : vector<16x128xf32>
    %22 = tpu.matmul %21, %19, %cst_16 {dimension_numbers = #tpu.dot_dimension_numbers<[1], [0], [0], [1], [0, 0, 1, 1], [], []>} : vector<16x128xbf16>, vector<128x128xbf16>, vector<16x128xf32> -> vector<16x128xf32>
    %23 = vector.broadcast %20 : vector<1x128xf32> to vector<16x128xf32>
    %24 = arith.addf %22, %23 : vector<16x128xf32>
    %cst_17 = arith.constant 0.00999999977 : f32
    %25 = vector.broadcast %cst_17 : f32 to vector<16x128xf32>
    %26 = arith.mulf %25, %24 : vector<16x128xf32>
    %27 = arith.maximumf %24, %26 : vector<16x128xf32>
    %c0_18 = arith.constant 0 : index
    %c0_19 = arith.constant 0 : index
    %28 = vector.load %arg8[%c0_18, %c0_19] : memref<16x128xf32, #tpu.memory_space<vmem>>, vector<16x128xf32>
    tpu.vector_store %arg8[%c0_18, %c0_19], %27 {strides = array<i32>} : memref<16x128xf32, #tpu.memory_space<vmem>>, vector<16x128xf32>,
    return
  }
  func.func @transform_0(%arg0: i32) -> (i32, i32) {
    %c0_i32 = arith.constant 0 : i32
    %c0_i32_0 = arith.constant 0 : i32
    return %arg0, %c0_i32 : i32, i32
  }
  func.func @transform_1(%arg0: i32) -> (i32, i32) {
    %c0_i32 = arith.constant 0 : i32
    %c0_i32_0 = arith.constant 0 : i32
    %c0_i32_1 = arith.constant 0 : i32
    return %c0_i32, %c0_i32_0 : i32, i32
  }
  func.func @transform_2(%arg0: i32) -> (i32, i32) {
    %c0_i32 = arith.constant 0 : i32
    %c0_i32_0 = arith.constant 0 : i32
    %c0_i32_1 = arith.constant 0 : i32
    return %c0_i32, %c0_i32_0 : i32, i32
  }
  func.func @transform_3(%arg0: i32) -> (i32, i32) {
    %c0_i32 = arith.constant 0 : i32
    %c0_i32_0 = arith.constant 0 : i32
    %c0_i32_1 = arith.constant 0 : i32
    return %c0_i32, %c0_i32_0 : i32, i32
  }
  func.func @transform_4(%arg0: i32) -> (i32, i32) {
    %c0_i32 = arith.constant 0 : i32
    %c0_i32_0 = arith.constant 0 : i32
    %c0_i32_1 = arith.constant 0 : i32
    return %c0_i32, %c0_i32_0 : i32, i32
  }
  func.func @transform_5(%arg0: i32) -> (i32, i32) {
    %c0_i32 = arith.constant 0 : i32
    %c0_i32_0 = arith.constant 0 : i32
    %c0_i32_1 = arith.constant 0 : i32
    return %c0_i32, %c0_i32_0 : i32, i32
  }
  func.func @transform_6(%arg0: i32) -> (i32, i32) {
    %c0_i32 = arith.constant 0 : i32
    %c0_i32_0 = arith.constant 0 : i32
    %c0_i32_1 = arith.constant 0 : i32
    return %c0_i32, %c0_i32_0 : i32, i32
  }
  func.func @transform_7(%arg0: i32) -> (i32, i32) {
    %c0_i32 = arith.constant 0 : i32
    %c0_i32_0 = arith.constant 0 : i32
    return %arg0, %c0_i32 : i32, i32
  }
}

</mosaic_0001>

<bundles_post_ra>
// kernel: mlp_base_forward.1
= control target key start
LH: loop header
LB: loop body
LE: loop exit
PB: predicated region body
PF: predicated region fallthrough
CT: control target
= control target key end

     0   :  { %12 = vsyncpa [#allocation3], 0  ;;  %s623_s0 = inlined_call_operand.vmem [shape: f32[16,128], index: 0, kind: input, shape index: {}]   ;;  %s624_s1 = inlined_call_operand.hbm [shape: bf16[128,128], index: 1, kind: input, shape index: {}]   ;;  %s625_s2 = inlined_call_operand.vmem [shape: f32[1,128], index: 2, kind: input, shape index: {}]   ;;  %s626_s3 = inlined_call_operand.hbm [shape: bf16[128,128], index: 3, kind: input, shape index: {}]   ;;  %s627_s4 = inlined_call_operand.vmem [shape: f32[1,128], index: 4, kind: input, shape index: {}]   ;;  %s628_s5 = inlined_call_operand.hbm [shape: bf16[128,128], index: 5, kind: input, shape index: {}]   ;;  %s629_s6 = inlined_call_operand.vmem [shape: f32[1,128], index: 6, kind: input, shape index: {}]   ;;  %s630_s7 = inlined_call_operand.vmem [shape: f32[16,128], index: 7, kind: output, shape index: {}]  }
   0x1   :  { %13 = vsyncpa [#allocation5], 0  ;;  %s35_s26 = sshll.u32 %s626_s3, 4  ;;  %s548_s27 = smov [#allocation4]   ;;  %s36_s26 = int_to_ptr.hbm [resolvable:$true] %s35_s26 }
   0x2   :  { %s37_s28 = sshll.u32 %s548_s27, 4  ;;  %s20_s8 = sshll.u32 %s624_s1, 4  ;;  %s38_s28 = int_to_ptr.vmem [resolvable:$true] %s37_s28  ;;  %s21_s8 = int_to_ptr.hbm [resolvable:$true] %s20_s8 }
   0x3   :  { %s549_s9 = smov 64   ;;  %s550_s10 = smov 4  }
   0x4   :  { %43 = dma.hbm_to_vmem [thread:$0]  %s36_s26, 1024, %s38_s28, [#allocation5], %s549_s9, %s549_s9, %s550_s10  }
   0x5   :  { %s551_s11 = smov [#allocation2]   ;;  %s50_s15 = sshll.u32 %s628_s5, 4  ;;  %s51_s15 = int_to_ptr.hbm [resolvable:$true] %s50_s15 }
   0x6   :  { %s22_s12 = sshll.u32 %s551_s11, 4  ;;  %s552_s3 = smov [#allocation6]   ;;  %s23_s12 = int_to_ptr.vmem [resolvable:$true] %s22_s12 }
   0x7   :  { %28 = dma.hbm_to_vmem [thread:$0]  %s21_s8, 1024, %s23_s12, [#allocation3], %s549_s9, %s549_s9, %s550_s10  }
   0x8   :  { %s52_s16 = sshll.u32 %s552_s3, 4  ;;  %s53_s16 = int_to_ptr.vmem [resolvable:$true] %s52_s16 }
   0x9   :  { %58 = dma.hbm_to_vmem [thread:$0]  %s51_s15, 1024, %s53_s16, [#allocation5], %s549_s9, %s549_s9, %s550_s10  }
   0xa   :  { %544 = dma.done.wait [#allocation3], 1024  }
   0xb   :  { %545 = vsyncadd [#allocation3], 4294966272 }
   0xc   :  { %546 = dma.done.wait [#allocation5], 2048  }
   0xd   :  { %547 = vsyncadd [#allocation5], 4294965248  ;;  %v447_v0 = vld [vmem:[#allocation2 + $0x38] sm:$0xff]  ;;  %v446_v1 = vld [vmem:[#allocation2 + $0x30] sm:$0xff] }
   0xe   :  { %144 = vmatpush.bf16.msra.mxu0 %v447_v0  ;;  %v455_v2 = vld [vmem:[#allocation4 + $0x38] sm:$0xff]  ;;  %v454_v3 = vld [vmem:[#allocation4 + $0x30] sm:$0xff]  ;;  %v445_v4 = vld [vmem:[#allocation2 + $0x28] sm:$0xff] }
   0xf   :  { %231 = vmatpush.bf16.msra.mxu1 %v455_v2  ;;  %v453_v5 = vld [vmem:[#allocation4 + $0x28] sm:$0xff]  ;;  %v444_v6 = vld [vmem:[#allocation2 + $0x20] sm:$0xff]  ;;  %v443_v8 = vld [vmem:[#allocation2 + $0x18] sm:$0xff] }
  0x10   :  { %v452_v7 = vld [vmem:[#allocation4 + $0x20] sm:$0xff]  ;;  %v442_v9 = vld [vmem:[#allocation2 + $0x10] sm:$0xff]  ;;  %v441_v10 = vld [vmem:[#allocation2 + $0x8] sm:$0xff] }
  0x11   :  { %v440_v11 = vld [vmem:[#allocation2] sm:$0xff]  ;;  %v74_v13 = vld [vmem:[%s623_s0 + $0x8] sm:$0xff]  ;;  %v451_v15 = vld [vmem:[#allocation4 + $0x18] sm:$0xff] }
  0x12   :  { %145 = vmatpush.bf16.msra.mxu0 %v446_v1  ;;  %v73_v12 = vld [vmem:[%s623_s0] sm:$0xff]  ;;  %v450_v16 = vld [vmem:[#allocation4 + $0x10] sm:$0xff]  ;;  %v449_v17 = vld [vmem:[#allocation4 + $0x8] sm:$0xff] }
  0x13   :  { %232 = vmatpush.bf16.msra.mxu1 %v454_v3  ;;  %v92_v14 = vpack.c.bf16 %v74_v13, %v73_v12  ;;  %v448_v18 = vld [vmem:[#allocation4] sm:$0xff]  ;;  %v463_v19 = vld [vmem:[#allocation6 + $0x38] sm:$0xff]  ;;  %v462_v20 = vld [vmem:[#allocation6 + $0x30] sm:$0xff] }
  0x14   :  { %318 = vmatpush.bf16.msra.mxu2 %v463_v19  ;;  %v461_v21 = vld [vmem:[#allocation6 + $0x28] sm:$0xff]  ;;  %v460_v22 = vld [vmem:[#allocation6 + $0x20] sm:$0xff]  ;;  %v459_v33 = vld [vmem:[#allocation6 + $0x18] sm:$0xff] }
  0x15   :  { %v469_v24 = vld [vmem:[%s625_s2] ss:$0 sm:$0xff]  ;;  %v458_v34 = vld [vmem:[#allocation6 + $0x10] sm:$0xff]  ;;  %v457_v35 = vld [vmem:[#allocation6 + $0x8] sm:$0xff] }
  0x16   :  { %146 = vmatpush.bf16.msra.mxu0 %v445_v4  ;;  %v456_v36 = vld [vmem:[#allocation6] sm:$0xff] }
  0x17   :  { %233 = vmatpush.bf16.msra.mxu1 %v453_v5  ;;  %v470_v38 = vld [vmem:[%s627_s4] ss:$0 sm:$0xff] }
  0x18   :  { %319 = vmatpush.bf16.msra.mxu2 %v462_v20  ;;  %v471_v47 = vld [vmem:[%s629_s6] ss:$0 sm:$0xff] }
  0x1a   :  { %147 = vmatpush.bf16.msra.mxu0 %v444_v6 }
  0x1b   :  { %234 = vmatpush.bf16.msra.mxu1 %v452_v7 }
  0x1c   :  { %320 = vmatpush.bf16.msra.mxu2 %v461_v21 }
  0x1e   :  { %148 = vmatpush.bf16.msra.mxu0 %v443_v8 }
  0x1f   :  { %235 = vmatpush.bf16.msra.mxu1 %v451_v15 }
  0x20   :  { %321 = vmatpush.bf16.msra.mxu2 %v460_v22 }
  0x22   :  { %149 = vmatpush.bf16.msra.mxu0 %v442_v9 }
  0x23   :  { %236 = vmatpush.bf16.msra.mxu1 %v450_v16 }
  0x24   :  { %322 = vmatpush.bf16.msra.mxu2 %v459_v33 }
  0x26   :  { %150 = vmatpush.bf16.msra.mxu0 %v441_v10 }
  0x27   :  { %237 = vmatpush.bf16.msra.mxu1 %v449_v17 }
  0x28   :  { %323 = vmatpush.bf16.msra.mxu2 %v458_v34 }
  0x2a   :  { %151 = vmatpush.bf16.msra.mxu0 %v440_v11 }
  0x2b   :  { %238 = vmatpush.bf16.msra.mxu1 %v448_v18 }
  0x2c   :  { %324 = vmatpush.bf16.msra.mxu2 %v457_v35 }
  0x2d   :  { %152 = vmatmul.bf16.vlgmr.msra.gmra.mxu0 %v92_v14 }
  0x30   :  { %325 = vmatpush.bf16.msra.mxu2 %v456_v36 }
  0xaa   :  { %v153_v23 = vpop.f32.mrf.mxu0 }
  0xab   :  { %v154_v25 = vadd.f32 %v469_v24, %v153_v23 }
  0xad   :  { %v158_v27 = vmul.f32 0.01, %v154_v25 }
  0xaf   :  { %v160_v30 = vmax.f32 %v154_v25, %v158_v27 }
  0xb2   :  { %v155_v26 = vpop.f32.mrf.mxu0 }
  0xb3   :  { %v156_v28 = vadd.f32 %v469_v24, %v155_v26 }
  0xb5   :  { %v159_v29 = vmul.f32 0.01, %v156_v28 }
  0xb7   :  { %v161_v31 = vmax.f32 %v156_v28, %v159_v29 }
  0xb9   :  { %v179_v32 = vpack.c.bf16 %v161_v31, %v160_v30 }
  0xbb   :  { %239 = vmatmul.bf16.vlgmr.msra.gmra.mxu1 %v179_v32 }
 0x138   :  { %v240_v37 = vpop.f32.mrf.mxu1 }
 0x139   :  { %v241_v39 = vadd.f32 %v470_v38, %v240_v37 }
 0x13b   :  { %v245_v41 = vmul.f32 0.01, %v241_v39 }
 0x13d   :  { %v247_v44 = vmax.f32 %v241_v39, %v245_v41 }
 0x140   :  { %v242_v40 = vpop.f32.mrf.mxu1 }
 0x141   :  { %v243_v42 = vadd.f32 %v470_v38, %v242_v40 }
 0x143   :  { %v246_v43 = vmul.f32 0.01, %v243_v42 }
 0x145   :  { %v248_v45 = vmax.f32 %v243_v42, %v246_v43 }
 0x147   :  { %v266_v46 = vpack.c.bf16 %v248_v45, %v247_v44 }
 0x149   :  { %326 = vmatmul.bf16.vlgmr.msra.gmra.mxu2 %v266_v46 }
 0x1cc   :  { %v327_v48 = vpop.f32.mrf.mxu2 }
 0x1cd   :  { %v328_v49 = vadd.f32 %v471_v47, %v327_v48 }
 0x1cf   :  { %v332_v50 = vmul.f32 0.01, %v328_v49 }
 0x1d1   :  { %v334_v51 = vmax.f32 %v328_v49, %v332_v50 }
 0x1d3   :  { %336 = vst [vmem:[%s630_s7] sm:$0xff] %v334_v51 }
 0x1d4   :  { %v329_v52 = vpop.f32.mrf.mxu2 }
 0x1d5   :  { %v330_v53 = vadd.f32 %v471_v47, %v329_v52 }
 0x1d7   :  { %v333_v54 = vmul.f32 0.01, %v330_v53 }
 0x1d9   :  { %v335_v55 = vmax.f32 %v330_v53, %v333_v54 }
 0x1db   :  { %337 = vst [vmem:[%s630_s7 + $0x8] sm:$0xff] %v335_v55 }
 0x1dc   :  { %342 = vsyncpa [#allocation3], 1 }
 0x1dd   :  { %343 = vsyncpa [#allocation5], 1 }

</bundles_post_ra>
